<compile_context>
chip_gen: v5e
topology: v5e:2x2
jax: 0.10.0
libtpu: 0.0.40
codegen_flags: <defaults>
</compile_context>

<pallas_src>
import functools

import jax
import jax.numpy as jnp
from jax.experimental import pallas as pl
from jax.experimental.pallas import tpu as pltpu

EPS = 1e-5          # nn.LayerNorm default
NEG_INF = -1e30     # additive softmax mask for padded key tokens


def _layernorm(x, gamma, beta):
    mu = jnp.mean(x, axis=-1, keepdims=True)
    var = jnp.mean(jnp.square(x - mu), axis=-1, keepdims=True)
    return (x - mu) * jax.lax.rsqrt(var + EPS) * gamma + beta


def _round_up(x, m):
    return (x + m - 1) // m * m


def _vmem_limit_bytes():
    """Generation-aware VMEM budget: 3/4 of physical, capped at 100 MiB.
    v5e/v6e (128 MiB physical) -> 96 MiB; v7x (64 MiB physical) -> 48 MiB."""
    try:
        cap = int(pltpu.get_tpu_info().vmem_capacity_bytes)
    except Exception:
        cap = 64 * 1024 * 1024          # conservative fallback
    return int(min(cap * 3 // 4, 100 * 1024 * 1024))


def _layer_footprint_bytes(bb, n_pad, D, inner, mlp):
    """Rough per-grid-step VMEM footprint of the fused layer kernel."""
    M = bb * n_pad
    act = M * (3 * inner + mlp + 4 * D) * 4     # qkv, ff hidden, x/x1/h/attn_out (f32)
    ctx = M * inner * 2                          # bf16 ctx scratch
    scores = 3 * bb * n_pad * n_pad * 4          # dots / exp / attn live per head
    io = 2 * 2 * M * D * 2                       # in+out blocks, double-buffered, bf16
    return act + ctx + scores + io


def _pick_block_b(B, n_pad, D, inner, mlp, vmem_limit, target_rows=512):
    """Batch elements per grid step: ~target_rows token rows/step, VMEM-bounded."""
    bb = max(1, min(B, max(1, target_rows // n_pad)))
    while bb > 1 and _layer_footprint_bytes(bb, n_pad, D, inner, mlp) > vmem_limit // 2:
        bb -= 1
    if B >= 2:
        # keep >=2 grid steps so v7x's two TensorCores both get a "parallel" slice
        bb = min(bb, B // 2)
    bb = max(bb, 1)
    while B % bb:
        bb -= 1
    return bb


# ---------------------------------------------------------------------------
# Pallas kernels
# ---------------------------------------------------------------------------
def patch_embed_kernel(p_ref, g1_ref, b1_ref, w_ref, bias_ref, g2_ref, b2_ref,
                       cls_ref, pos_ref, o_ref, *, n_pad):
    # p_ref: (bB, Np, patch_dim) -> LN -> Linear(bf16 matmul) -> LN,
    # then write [cls | patches | zero-pad] + pos_embedding to (bB, n_pad, D) bf16.
    bB, Np, Pd = p_ref.shape
    D = w_ref.shape[1]
    od = o_ref.dtype

    x = p_ref[...].reshape(bB * Np, Pd)                     # leading-dim merge
    x = _layernorm(x, g1_ref[0], b1_ref[0])
    x = jnp.dot(x.astype(jnp.bfloat16), w_ref[...],
                preferred_element_type=jnp.float32) + bias_ref[0]
    x = _layernorm(x, g2_ref[0], b2_ref[0])
    x = x.reshape(bB, Np, D)

    cls_row = cls_ref[0] + pos_ref[0, :]                    # (D,)
    o_ref[:, 0:1, :] = jnp.broadcast_to(cls_row[None, None, :],
                                        (bB, 1, D)).astype(od)
    o_ref[:, 1:Np + 1, :] = (x + pos_ref[1:Np + 1, :][None]).astype(od)
    if n_pad > Np + 1:                                      # zero the pad rows
        o_ref[:, Np + 1:, :] = jnp.zeros((bB, n_pad - Np - 1, D), od)


def layer_kernel(x_ref, mask_ref, a_g_ref, a_b_ref, wqkv_ref, wo_ref, bo_ref,
                 f_g_ref, f_b_ref, w1_ref, b1_ref, w2_ref, b2_ref,
                 o_ref, ctx_ref, *, heads, dim_head):
    # Fused transformer block for a block of bB batch elements.
    bB, Npad, D = x_ref.shape
    M = bB * Npad
    inner = heads * dim_head
    scale = dim_head ** -0.5
    bf16 = jnp.bfloat16

    x = x_ref[...].astype(jnp.float32)                      # bf16 HBM -> f32
    xf = x.reshape(M, D)

    # ---------------- PreNorm + Attention ----------------
    h = _layernorm(xf, a_g_ref[0], a_b_ref[0])
    qkv = jnp.dot(h.astype(bf16), wqkv_ref[...],
                  preferred_element_type=jnp.float32)       # (M, 3*inner)
    qkv = qkv.reshape(bB, Npad, 3 * inner)                  # leading-dim split

    mask_bias = mask_ref[0]                                 # (Npad,) f32: 0 / -1e30

    for hh in range(heads):                                 # static head loop
        s = hh * dim_head
        q = qkv[:, :, s:s + dim_head] * scale               # pre-scale q
        k = qkv[:, :, inner + s:inner + s + dim_head]
        v = qkv[:, :, 2 * inner + s:2 * inner + s + dim_head]

        dots = jnp.einsum("bnd,bmd->bnm", q.astype(bf16), k.astype(bf16),
                          preferred_element_type=jnp.float32)
        dots = dots + mask_bias[None, None, :]              # additive key mask
        dots = dots - jnp.max(dots, axis=-1, keepdims=True)
        e = jnp.exp(dots)
        attn = e * pl.reciprocal(jnp.sum(e, axis=-1, keepdims=True),
                                 approx=True)
        ctx = jnp.einsum("bnm,bmd->bnd", attn.astype(bf16), v.astype(bf16),
                         preferred_element_type=jnp.float32)
        # stage this head's context; single K=inner output projection below
        ctx_ref[:, s:s + dim_head] = ctx.reshape(M, dim_head).astype(bf16)

    attn_out = jnp.dot(ctx_ref[...], wo_ref[...],
                       preferred_element_type=jnp.float32) + bo_ref[0]
    x1 = xf + attn_out                                      # residual

    # ---------------- PreNorm + FeedForward ----------------
    h2 = _layernorm(x1, f_g_ref[0], f_b_ref[0])
    h2 = jnp.dot(h2.astype(bf16), w1_ref[...],
                 preferred_element_type=jnp.float32) + b1_ref[0]
    h2 = jax.nn.gelu(h2, approximate=False)   # exact erf GELU == nn.GELU()
    h2 = jnp.dot(h2.astype(bf16), w2_ref[...],
                 preferred_element_type=jnp.float32) + b2_ref[0]
    x2 = x1 + h2                                            # residual

    o_ref[...] = x2.reshape(bB, Npad, D).astype(o_ref.dtype)


# ---------------------------------------------------------------------------
# pallas_call wrappers
# ---------------------------------------------------------------------------
def patch_embed_call(patches, p, pos_pad, *, n_pad, block_b, vmem_limit):
    B, Np, Pd = patches.shape
    D = p["w_patch"].shape[1]
    kernel = functools.partial(patch_embed_kernel, n_pad=n_pad)
    return pl.pallas_call(
        kernel,
        out_shape=jax.ShapeDtypeStruct((B, n_pad, D), jnp.bfloat16),
        grid=(B // block_b,),
        in_specs=[
            pl.BlockSpec((block_b, Np, Pd), lambda b: (b, 0, 0)),
            pl.BlockSpec((1, Pd), lambda b: (0, 0)),
            pl.BlockSpec((1, Pd), lambda b: (0, 0)),
            pl.BlockSpec((Pd, D), lambda b: (0, 0)),
            pl.BlockSpec((1, D), lambda b: (0, 0)),
            pl.BlockSpec((1, D), lambda b: (0, 0)),
            pl.BlockSpec((1, D), lambda b: (0, 0)),
            pl.BlockSpec((1, D), lambda b: (0, 0)),
            pl.BlockSpec((n_pad, D), lambda b: (0, 0)),
        ],
        out_specs=pl.BlockSpec((block_b, n_pad, D), lambda b: (b, 0, 0)),
        compiler_params=pltpu.CompilerParams(
            dimension_semantics=("parallel",),
            vmem_limit_bytes=vmem_limit),
    )(patches, p["ln1_g"], p["ln1_b"], p["w_patch"], p["b_patch"],
      p["ln2_g"], p["ln2_b"], p["cls_token"], pos_pad)


def layer_call(x, mask_bias, lp, *, heads, dim_head, block_b, vmem_limit):
    B, Npad, D = x.shape
    inner = heads * dim_head
    Hd = lp["w1"].shape[1]
    kernel = functools.partial(layer_kernel, heads=heads, dim_head=dim_head)

    def wspec(r, c):
        return pl.BlockSpec((r, c), lambda b: (0, 0))

    return pl.pallas_call(
        kernel,
        out_shape=jax.ShapeDtypeStruct((B, Npad, D), jnp.bfloat16),
        grid=(B // block_b,),
        in_specs=[
            pl.BlockSpec((block_b, Npad, D), lambda b: (b, 0, 0)),
            wspec(1, Npad),                       # additive key mask
            wspec(1, D), wspec(1, D),
            wspec(D, 3 * inner),
            wspec(inner, D), wspec(1, D),
            wspec(1, D), wspec(1, D),
            wspec(D, Hd), wspec(1, Hd),
            wspec(Hd, D), wspec(1, D),
        ],
        out_specs=pl.BlockSpec((block_b, Npad, D), lambda b: (b, 0, 0)),
        scratch_shapes=[pltpu.VMEM((block_b * Npad, inner), jnp.bfloat16)],
        compiler_params=pltpu.CompilerParams(
            dimension_semantics=("parallel",),
            vmem_limit_bytes=vmem_limit),
    )(x, mask_bias, lp["attn_ln_g"], lp["attn_ln_b"], lp["w_qkv"], lp["w_out"],
      lp["b_out"], lp["ff_ln_g"], lp["ff_ln_b"], lp["w1"], lp["b1"],
      lp["w2"], lp["b2"])


# ---------------------------------------------------------------------------
# ViT forward (glue: patchify, padding, pooling, final LayerNorm)
# ---------------------------------------------------------------------------
def patchify(img, patch_size):
    # rearrange 'b c (h p1) (w p2) -> b (h w) (p1 p2 c)'
    B, C, H, W = img.shape
    ps = patch_size
    hp, wp = H // ps, W // ps
    x = img.reshape(B, C, hp, ps, wp, ps)
    x = jnp.transpose(x, (0, 2, 4, 3, 5, 1))
    return x.reshape(B, hp * wp, ps * ps * C)


def vit_forward(img, p, cfg):
    x = patchify(img, cfg["patch_size"])                     # (B, Np, patch_dim)
    B, Np, _ = x.shape
    n_real = Np + 1                                          # + cls token
    n_pad = _round_up(n_real, 128)                           # lane-dense attention
    D = cfg["dim"]
    inner = cfg["heads"] * cfg["dim_head"]
    vmem_limit = _vmem_limit_bytes()
    block_b = _pick_block_b(B, n_pad, D, inner, cfg["mlp_dim"], vmem_limit)

    pos = p["pos_embedding"][0, :n_real]                     # (n_real, D)
    pos_pad = jnp.pad(pos, ((0, n_pad - n_real), (0, 0)))    # (n_pad, D)

    # additive softmax bias for padded key columns: 0 for real, -1e30 for pad
    mask_bias = jnp.where(jnp.arange(n_pad) < n_real, 0.0,
                          NEG_INF).astype(jnp.float32)[None, :]  # (1, n_pad)

    tok = patch_embed_call(x, p, pos_pad, n_pad=n_pad, block_b=block_b,
                           vmem_limit=vmem_limit)
    # emb_dropout == 0.0 -> identity
    for lp in p["layers"]:
        tok = layer_call(tok, mask_bias, lp, heads=cfg["heads"],
                         dim_head=cfg["dim_head"], block_b=block_b,
                         vmem_limit=vmem_limit)

    tok = tok[:, :n_real].astype(jnp.float32)                # drop pad rows
    pooled = jnp.mean(tok, axis=1) if cfg["pool"] == "mean" else tok[:, 0]
    # mlp_head == LayerNorm(dim) on (B, D): tiny, left to XLA.
    return _layernorm(pooled, p["head_ln_g"][0], p["head_ln_b"][0])


# ---------------------------------------------------------------------------
# Pure-JAX reference (for numerical sanity check)
# ---------------------------------------------------------------------------
def vit_reference(img, p, cfg):
    f32 = lambda a: a.astype(jnp.float32)
    with jax.default_matmul_precision("highest"):
        x = patchify(img, cfg["patch_size"])
        x = _layernorm(x, p["ln1_g"][0], p["ln1_b"][0])
        x = x @ f32(p["w_patch"]) + p["b_patch"][0]
        x = _layernorm(x, p["ln2_g"][0], p["ln2_b"][0])
        B = x.shape[0]
        cls = jnp.broadcast_to(p["cls_token"][None], (B, 1, cfg["dim"]))
        x = jnp.concatenate([cls, x], axis=1)
        x = x + p["pos_embedding"][:, : x.shape[1]]
        heads, dh = cfg["heads"], cfg["dim_head"]
        inner = heads * dh
        for lp in p["layers"]:
            h = _layernorm(x, lp["attn_ln_g"][0], lp["attn_ln_b"][0])
            qkv = h @ f32(lp["w_qkv"])
            q, k, v = jnp.split(qkv, 3, axis=-1)
            sh = lambda t: t.reshape(B, -1, heads, dh).transpose(0, 2, 1, 3)
            q, k, v = sh(q), sh(k), sh(v)
            dots = jnp.einsum("bhnd,bhmd->bhnm", q, k) * (dh ** -0.5)
            attn = jax.nn.softmax(dots, axis=-1)
            out = jnp.einsum("bhnm,bhmd->bhnd", attn, v)
            out = out.transpose(0, 2, 1, 3).reshape(B, -1, inner)
            x = x + out @ f32(lp["w_out"]) + lp["b_out"][0]
            h = _layernorm(x, lp["ff_ln_g"][0], lp["ff_ln_b"][0])
            h = jax.nn.gelu(h @ f32(lp["w1"]) + lp["b1"][0], approximate=False)
            x = x + h @ f32(lp["w2"]) + lp["b2"][0]
        pooled = jnp.mean(x, axis=1) if cfg["pool"] == "mean" else x[:, 0]
        return _layernorm(pooled, p["head_ln_g"][0], p["head_ln_b"][0])


# ---------------------------------------------------------------------------
# Deterministic parameter init (synthetic; shapes follow the nn.Module __init__)
# Matmul weights stored bf16 (half the weight DMA bytes / VMEM); everything
# that feeds element-wise math (LN params, biases, pos/cls) stays f32.
# ---------------------------------------------------------------------------
def init_vit_params(seed, cfg):
    dim, heads, dh = cfg["dim"], cfg["heads"], cfg["dim_head"]
    inner = heads * dh
    mlp, depth = cfg["mlp_dim"], cfg["depth"]
    ps, C = cfg["patch_size"], cfg["channels"]
    num_patches = (cfg["image_size"] // ps) ** 2
    patch_dim = C * ps * ps

    keys = iter(jax.random.split(jax.random.PRNGKey(seed), 8 + 8 * depth))

    def nrm(shape, scale=0.02, dtype=jnp.float32):
        return (scale * jax.random.normal(next(keys), shape)).astype(dtype)

    ones = lambda n: jnp.ones((1, n), jnp.float32)
    zeros = lambda n: jnp.zeros((1, n), jnp.float32)
    bf = jnp.bfloat16

    p = dict(
        ln1_g=ones(patch_dim), ln1_b=zeros(patch_dim),
        w_patch=nrm((patch_dim, dim), dtype=bf), b_patch=zeros(dim),
        ln2_g=ones(dim), ln2_b=zeros(dim),
        pos_embedding=nrm((1, num_patches + 1, dim), scale=1.0),
        cls_token=nrm((1, dim), scale=1.0),
        head_ln_g=ones(dim), head_ln_b=zeros(dim),
        layers=[],
    )
    for _ in range(depth):
        p["layers"].append(dict(
            attn_ln_g=ones(dim), attn_ln_b=zeros(dim),
            w_qkv=nrm((dim, 3 * inner), dtype=bf),
            w_out=nrm((inner, dim), dtype=bf), b_out=zeros(dim),
            ff_ln_g=ones(dim), ff_ln_b=zeros(dim),
            w1=nrm((dim, mlp), dtype=bf), b1=zeros(mlp),
            w2=nrm((mlp, dim), dtype=bf), b2=zeros(dim),
        ))
    return p


if __name__ == "__main__":
    cfg = dict(image_size=16, patch_size=4, dim=32, depth=2, heads=4,
               dim_head=8, mlp_dim=64, channels=4, pool="cls")
    params = init_vit_params(0, cfg)

    img = jax.random.normal(jax.random.PRNGKey(0), (2, 4, 16, 16), jnp.float32)

    out = jax.block_until_ready(vit_forward(img, params, cfg))
    assert out.shape == (2, cfg["dim"]), out.shape

    ref = vit_reference(img, params, cfg)
    err_max = float(jnp.max(jnp.abs(out - ref)))
    err_mean = float(jnp.mean(jnp.abs(out - ref)))
    # Kernel uses bf16 matmul operands AND a bf16 inter-layer residual stream
    # (HBM traffic halved); reference runs the same bf16-valued weights in
    # f32/highest precision with an f32 residual -> tolerance accounts for the
    # per-layer bf16 rounding of the residual stream.
    assert err_max < 1e-1 and err_mean < 2e-2, \
        f"err vs reference: max={err_max}, mean={err_mean}"

    print("KERNEL_OK")
</pallas_src>

<mosaic_0001>
module attributes {stable_mosaic.version = 11 : i64} {
  func.func @patch_embed_kernel(%arg0: i32, %arg1: memref<1x16x64xf32, #tpu.memory_space<vmem>>, %arg2: memref<1x64xf32, #tpu.memory_space<vmem>>, %arg3: memref<1x64xf32, #tpu.memory_space<vmem>>, %arg4: memref<64x32xbf16, #tpu.memory_space<vmem>>, %arg5: memref<1x32xf32, #tpu.memory_space<vmem>>, %arg6: memref<1x32xf32, #tpu.memory_space<vmem>>, %arg7: memref<1x32xf32, #tpu.memory_space<vmem>>, %arg8: memref<1x32xf32, #tpu.memory_space<vmem>>, %arg9: memref<128x32xf32, #tpu.memory_space<vmem>>, %arg10: memref<1x128x32xbf16, #tpu.memory_space<vmem>>) attributes {dimension_semantics = [#tpu.dimension_semantics<parallel>], iteration_bounds = array<i64: 2>, scalar_prefetch = 0 : i64, scratch_operands = 0 : i64, tpu.core_type = #tpu.core_type<tc>, window_params = [{transform_indices = @transform_0, window_bounds = array<i64: 1, 16, 64>}, {pipeline_mode = #tpu.pipeline_mode<synchronous>, transform_indices = @transform_1, window_bounds = array<i64: 1, 64>}, {pipeline_mode = #tpu.pipeline_mode<synchronous>, transform_indices = @transform_2, window_bounds = array<i64: 1, 64>}, {pipeline_mode = #tpu.pipeline_mode<synchronous>, transform_indices = @transform_3, window_bounds = array<i64: 64, 32>}, {pipeline_mode = #tpu.pipeline_mode<synchronous>, transform_indices = @transform_4, window_bounds = array<i64: 1, 32>}, {pipeline_mode = #tpu.pipeline_mode<synchronous>, transform_indices = @transform_5, window_bounds = array<i64: 1, 32>}, {pipeline_mode = #tpu.pipeline_mode<synchronous>, transform_indices = @transform_6, window_bounds = array<i64: 1, 32>}, {pipeline_mode = #tpu.pipeline_mode<synchronous>, transform_indices = @transform_7, window_bounds = array<i64: 1, 32>}, {pipeline_mode = #tpu.pipeline_mode<synchronous>, transform_indices = @transform_8, window_bounds = array<i64: 128, 32>}, {transform_indices = @transform_9, window_bounds = array<i64: 1, 128, 32>}]} {
    %c0 = arith.constant 0 : index
    %c0_0 = arith.constant 0 : index
    %c0_1 = arith.constant 0 : index
    %0 = vector.load %arg1[%c0, %c0_0, %c0_1] : memref<1x16x64xf32, #tpu.memory_space<vmem>>, vector<1x16x64xf32>
    %1 = vector.shape_cast %0 : vector<1x16x64xf32> to vector<16x64xf32>
    %c0_2 = arith.constant 0 : index
    %c0_3 = arith.constant 0 : index
    %2 = vector.load %arg2[%c0_2, %c0_3] : memref<1x64xf32, #tpu.memory_space<vmem>>, vector<1x64xf32>
    %3 = vector.shape_cast %2 : vector<1x64xf32> to vector<64xf32>
    %c0_4 = arith.constant 0 : index
    %c0_5 = arith.constant 0 : index
    %4 = vector.load %arg3[%c0_4, %c0_5] : memref<1x64xf32, #tpu.memory_space<vmem>>, vector<1x64xf32>
    %5 = vector.shape_cast %4 : vector<1x64xf32> to vector<64xf32>
    %cst = arith.constant dense<0.000000e+00> : vector<16xf32>
    %6 = vector.multi_reduction <add>, %1, %cst [1] : vector<16x64xf32> to vector<16xf32>
    %7 = vector.shape_cast %6 : vector<16xf32> to vector<16x1xf32>
    %cst_6 = arith.constant 6.400000e+01 : f32
    %8 = vector.broadcast %cst_6 : f32 to vector<16x1xf32>
    %9 = arith.divf %7, %8 : vector<16x1xf32>
    %10 = vector.broadcast %9 : vector<16x1xf32> to vector<16x64xf32>
    %11 = arith.subf %1, %10 : vector<16x64xf32>
    %12 = arith.mulf %11, %11 : vector<16x64xf32>
    %cst_7 = arith.constant dense<0.000000e+00> : vector<16xf32>
    %13 = vector.multi_reduction <add>, %12, %cst_7 [1] : vector<16x64xf32> to vector<16xf32>
    %14 = vector.shape_cast %13 : vector<16xf32> to vector<16x1xf32>
    %cst_8 = arith.constant 6.400000e+01 : f32
    %15 = vector.broadcast %cst_8 : f32 to vector<16x1xf32>
    %16 = arith.divf %14, %15 : vector<16x1xf32>
    %17 = vector.broadcast %9 : vector<16x1xf32> to vector<16x64xf32>
    %18 = arith.subf %1, %17 : vector<16x64xf32>
    %cst_9 = arith.constant 9.99999974E-6 : f32
    %19 = vector.broadcast %cst_9 : f32 to vector<16x1xf32>
    %20 = arith.addf %16, %19 : vector<16x1xf32>
    %21 = math.rsqrt %20 : vector<16x1xf32>
    %22 = vector.broadcast %21 : vector<16x1xf32> to vector<16x64xf32>
    %23 = arith.mulf %18, %22 : vector<16x64xf32>
    %24 = vector.shape_cast %3 : vector<64xf32> to vector<1x64xf32>
    %25 = vector.broadcast %24 : vector<1x64xf32> to vector<16x64xf32>
    %26 = arith.mulf %23, %25 : vector<16x64xf32>
    %27 = vector.shape_cast %5 : vector<64xf32> to vector<1x64xf32>
    %28 = vector.broadcast %27 : vector<1x64xf32> to vector<16x64xf32>
    %29 = arith.addf %26, %28 : vector<16x64xf32>
    %30 = arith.truncf %29 : vector<16x64xf32> to vector<16x64xbf16>
    %c0_10 = arith.constant 0 : index
    %c0_11 = arith.constant 0 : index
    %31 = vector.load %arg4[%c0_10, %c0_11] : memref<64x32xbf16, #tpu.memory_space<vmem>>, vector<64x32xbf16>
    %cst_12 = arith.constant dense<0.000000e+00> : vector<16x32xf32>
    %32 = tpu.matmul %30, %31, %cst_12 {dimension_numbers = #tpu.dot_dimension_numbers<[1], [0], [0], [1], [0, 0, 1, 1], [], []>} : vector<16x64xbf16>, vector<64x32xbf16>, vector<16x32xf32> -> vector<16x32xf32>
    %c0_13 = arith.constant 0 : index
    %c0_14 = arith.constant 0 : index
    %33 = vector.load %arg5[%c0_13, %c0_14] : memref<1x32xf32, #tpu.memory_space<vmem>>, vector<1x32xf32>
    %34 = vector.shape_cast %33 : vector<1x32xf32> to vector<32xf32>
    %35 = vector.shape_cast %34 : vector<32xf32> to vector<1x32xf32>
    %36 = vector.broadcast %35 : vector<1x32xf32> to vector<16x32xf32>
    %37 = arith.addf %32, %36 : vector<16x32xf32>
    %c0_15 = arith.constant 0 : index
    %c0_16 = arith.constant 0 : index
    %38 = vector.load %arg6[%c0_15, %c0_16] : memref<1x32xf32, #tpu.memory_space<vmem>>, vector<1x32xf32>
    %39 = vector.shape_cast %38 : vector<1x32xf32> to vector<32xf32>
    %c0_17 = arith.constant 0 : index
    %c0_18 = arith.constant 0 : index
    %40 = vector.load %arg7[%c0_17, %c0_18] : memref<1x32xf32, #tpu.memory_space<vmem>>, vector<1x32xf32>
    %41 = vector.shape_cast %40 : vector<1x32xf32> to vector<32xf32>
    %cst_19 = arith.constant dense<0.000000e+00> : vector<16xf32>
    %42 = vector.multi_reduction <add>, %37, %cst_19 [1] : vector<16x32xf32> to vector<16xf32>
    %43 = vector.shape_cast %42 : vector<16xf32> to vector<16x1xf32>
    %cst_20 = arith.constant 3.200000e+01 : f32
    %44 = vector.broadcast %cst_20 : f32 to vector<16x1xf32>
    %45 = arith.divf %43, %44 : vector<16x1xf32>
    %46 = vector.broadcast %45 : vector<16x1xf32> to vector<16x32xf32>
    %47 = arith.subf %37, %46 : vector<16x32xf32>
    %48 = arith.mulf %47, %47 : vector<16x32xf32>
    %cst_21 = arith.constant dense<0.000000e+00> : vector<16xf32>
    %49 = vector.multi_reduction <add>, %48, %cst_21 [1] : vector<16x32xf32> to vector<16xf32>
    %50 = vector.shape_cast %49 : vector<16xf32> to vector<16x1xf32>
    %cst_22 = arith.constant 3.200000e+01 : f32
    %51 = vector.broadcast %cst_22 : f32 to vector<16x1xf32>
    %52 = arith.divf %50, %51 : vector<16x1xf32>
    %53 = vector.broadcast %45 : vector<16x1xf32> to vector<16x32xf32>
    %54 = arith.subf %37, %53 : vector<16x32xf32>
    %cst_23 = arith.constant 9.99999974E-6 : f32
    %55 = vector.broadcast %cst_23 : f32 to vector<16x1xf32>
    %56 = arith.addf %52, %55 : vector<16x1xf32>
    %57 = math.rsqrt %56 : vector<16x1xf32>
    %58 = vector.broadcast %57 : vector<16x1xf32> to vector<16x32xf32>
    %59 = arith.mulf %54, %58 : vector<16x32xf32>
    %60 = vector.shape_cast %39 : vector<32xf32> to vector<1x32xf32>
    %61 = vector.broadcast %60 : vector<1x32xf32> to vector<16x32xf32>
    %62 = arith.mulf %59, %61 : vector<16x32xf32>
    %63 = vector.shape_cast %41 : vector<32xf32> to vector<1x32xf32>
    %64 = vector.broadcast %63 : vector<1x32xf32> to vector<16x32xf32>
    %65 = arith.addf %62, %64 : vector<16x32xf32>
    %66 = vector.shape_cast %65 : vector<16x32xf32> to vector<1x16x32xf32>
    %c0_24 = arith.constant 0 : index
    %c0_25 = arith.constant 0 : index
    %67 = vector.load %arg8[%c0_24, %c0_25] : memref<1x32xf32, #tpu.memory_space<vmem>>, vector<1x32xf32>
    %68 = vector.shape_cast %67 : vector<1x32xf32> to vector<32xf32>
    %c0_26 = arith.constant 0 : index
    %c0_27 = arith.constant 0 : index
    %69 = vector.load %arg9[%c0_26, %c0_27] : memref<128x32xf32, #tpu.memory_space<vmem>>, vector<1x32xf32>
    %70 = vector.shape_cast %69 : vector<1x32xf32> to vector<32xf32>
    %71 = arith.addf %68, %70 : vector<32xf32>
    %72 = vector.shape_cast %71 : vector<32xf32> to vector<1x1x32xf32>
    %73 = arith.truncf %72 : vector<1x1x32xf32> to vector<1x1x32xbf16>
    %c0_28 = arith.constant 0 : index
    %c0_29 = arith.constant 0 : index
    %c0_30 = arith.constant 0 : index
    %74 = vector.load %arg10[%c0_28, %c0_29, %c0_30] : memref<1x128x32xbf16, #tpu.memory_space<vmem>>, vector<1x1x32xbf16>
    tpu.vector_store %arg10[%c0_28, %c0_29, %c0_30], %73 {strides = array<i32>} : memref<1x128x32xbf16, #tpu.memory_space<vmem>>, vector<1x1x32xbf16>,
    %c1 = arith.constant 1 : index
    %c0_31 = arith.constant 0 : index
    %75 = vector.load %arg9[%c1, %c0_31] : memref<128x32xf32, #tpu.memory_space<vmem>>, vector<16x32xf32>
    %76 = vector.shape_cast %75 : vector<16x32xf32> to vector<1x16x32xf32>
    %77 = arith.addf %66, %76 : vector<1x16x32xf32>
    %78 = arith.truncf %77 : vector<1x16x32xf32> to vector<1x16x32xbf16>
    %c0_32 = arith.constant 0 : index
    %c1_33 = arith.constant 1 : index
    %c0_34 = arith.constant 0 : index
    %79 = vector.load %arg10[%c0_32, %c1_33, %c0_34] : memref<1x128x32xbf16, #tpu.memory_space<vmem>>, vector<1x16x32xbf16>
    tpu.vector_store %arg10[%c0_32, %c1_33, %c0_34], %78 {strides = array<i32>} : memref<1x128x32xbf16, #tpu.memory_space<vmem>>, vector<1x16x32xbf16>,
    %cst_35 = arith.constant 0.000000e+00 : bf16
    %80 = vector.broadcast %cst_35 : bf16 to vector<1x111x32xbf16>
    %c0_36 = arith.constant 0 : index
    %c17 = arith.constant 17 : index
    %c0_37 = arith.constant 0 : index
    %81 = vector.load %arg10[%c0_36, %c17, %c0_37] : memref<1x128x32xbf16, #tpu.memory_space<vmem>>, vector<1x111x32xbf16>
    tpu.vector_store %arg10[%c0_36, %c17, %c0_37], %80 {strides = array<i32>} : memref<1x128x32xbf16, #tpu.memory_space<vmem>>, vector<1x111x32xbf16>,
    return
  }
  func.func @transform_0(%arg0: i32) -> (i32, i32, i32) {
    %c0_i32 = arith.constant 0 : i32
    %c0_i32_0 = arith.constant 0 : i32
    %c0_i32_1 = arith.constant 0 : i32
    return %arg0, %c0_i32, %c0_i32_0 : i32, i32, i32
  }
  func.func @transform_1(%arg0: i32) -> (i32, i32) {
    %c0_i32 = arith.constant 0 : i32
    %c0_i32_0 = arith.constant 0 : i32
    %c0_i32_1 = arith.constant 0 : i32
    return %c0_i32, %c0_i32_0 : i32, i32
  }
  func.func @transform_2(%arg0: i32) -> (i32, i32) {
    %c0_i32 = arith.constant 0 : i32
    %c0_i32_0 = arith.constant 0 : i32
    %c0_i32_1 = arith.constant 0 : i32
    return %c0_i32, %c0_i32_0 : i32, i32
  }
  func.func @transform_3(%arg0: i32) -> (i32, i32) {
    %c0_i32 = arith.constant 0 : i32
    %c0_i32_0 = arith.constant 0 : i32
    %c0_i32_1 = arith.constant 0 : i32
    return %c0_i32, %c0_i32_0 : i32, i32
  }
  func.func @transform_4(%arg0: i32) -> (i32, i32) {
    %c0_i32 = arith.constant 0 : i32
    %c0_i32_0 = arith.constant 0 : i32
    %c0_i32_1 = arith.constant 0 : i32
    return %c0_i32, %c0_i32_0 : i32, i32
  }
  func.func @transform_5(%arg0: i32) -> (i32, i32) {
    %c0_i32 = arith.constant 0 : i32
    %c0_i32_0 = arith.constant 0 : i32
    %c0_i32_1 = arith.constant 0 : i32
    return %c0_i32, %c0_i32_0 : i32, i32
  }
  func.func @transform_6(%arg0: i32) -> (i32, i32) {
    %c0_i32 = arith.constant 0 : i32
    %c0_i32_0 = arith.constant 0 : i32
    %c0_i32_1 = arith.constant 0 : i32
    return %c0_i32, %c0_i32_0 : i32, i32
  }
  func.func @transform_7(%arg0: i32) -> (i32, i32) {
    %c0_i32 = arith.constant 0 : i32
    %c0_i32_0 = arith.constant 0 : i32
    %c0_i32_1 = arith.constant 0 : i32
    return %c0_i32, %c0_i32_0 : i32, i32
  }
  func.func @transform_8(%arg0: i32) -> (i32, i32) {
    %c0_i32 = arith.constant 0 : i32
    %c0_i32_0 = arith.constant 0 : i32
    %c0_i32_1 = arith.constant 0 : i32
    return %c0_i32, %c0_i32_0 : i32, i32
  }
  func.func @transform_9(%arg0: i32) -> (i32, i32, i32) {
    %c0_i32 = arith.constant 0 : i32
    %c0_i32_0 = arith.constant 0 : i32
    %c0_i32_1 = arith.constant 0 : i32
    return %arg0, %c0_i32, %c0_i32_0 : i32, i32, i32
  }
}

</mosaic_0001>

<bundles_post_ra>
// kernel: tpu_custom_call.1
= control target key start
LH: loop header
LB: loop body
LE: loop exit
PB: predicated region body
PF: predicated region fallthrough
CT: control target
= control target key end

     0   :  { %s761_s30 = smov 0   ;;  %s879_s0 = inlined_call_operand.vmem [shape: f32[2,16,64], index: 0, kind: input, shape index: {}]   ;;  %s880_s1 = inlined_call_operand.vmem [shape: f32[1,64], index: 1, kind: input, shape index: {}]   ;;  %s881_s2 = inlined_call_operand.vmem [shape: f32[1,64], index: 2, kind: input, shape index: {}]   ;;  %s882_s3 = inlined_call_operand.vmem [shape: bf16[64,32], index: 3, kind: input, shape index: {}]   ;;  %s883_s4 = inlined_call_operand.vmem [shape: f32[1,32], index: 4, kind: input, shape index: {}]   ;;  %s884_s5 = inlined_call_operand.vmem [shape: f32[1,32], index: 5, kind: input, shape index: {}]   ;;  %s885_s6 = inlined_call_operand.vmem [shape: f32[1,32], index: 6, kind: input, shape index: {}]   ;;  %s886_s7 = inlined_call_operand.vmem [shape: f32[1,32], index: 7, kind: input, shape index: {}]   ;;  %s887_s8 = inlined_call_operand.vmem [shape: f32[128,32], index: 8, kind: input, shape index: {}]   ;;  %s888_s9 = inlined_call_operand.vmem [shape: bf16[2,128,32], index: 9, kind: output, shape index: {}]  }
   0x1 LB: > { %s638_s10 = sadd.s32 4294967295, %s706_s30   ;;  %p642_p0 = scmp.ge.s32.totalorder %s706_s30, 1  ;;  %s706_s30 = sphi %s761_s30, %s19_s30  }
   0x2   : > { %p287_p1 = scmp.lt.s32.totalorder %s706_s30, 3 }
   0x4   : > { %p288_p2 = pnand %p642_p0, %p287_p1 }
   0x5   : > { %p323_p3 = scmp.lt.s32.totalorder (!%p288_p2), %s638_s10, 1 }
   0x6   : > { %291 = sbr.rel (%p288_p2) target bundleno = 719 (0x2cf), region = 56 }
   0xb   : > { %s892_s10 = smov (!%p323_p3, %s638_s10), 1  ;;  %vm338_vm0 = vcmask 523264   ;;  %v708_v4 = vmov 64.0   ;;  %v671_v21 = vld [vmem:[%s882_s3 + $0x18] sm:$0xff]  ;;  %v670_v22 = vld [vmem:[%s882_s3 + $0x10] sm:$0xff]  ;;  %v669_v23 = vld [vmem:[%s882_s3 + $0x8] sm:$0xff] }
   0xc   : > { %s666_s11 = sshll.u32 %s892_s10, 4  ;;  %688 = vrcp.f32 %v708_v4  ;;  %444 = vmatpush.bf16.msra.mxu0 %v671_v21  ;;  %v668_v25 = vld [vmem:[%s882_s3] sm:$0xff]  ;;  %vm456_vm8 = vcmask 261120   ;;  %v709_v61 = vmov 32.0   ;;  %s667_s29 = sshll.u32 %s892_s10, 6  ;;  %vm522_vm9 = vcmask 253952  }
   0xd   : > { %s327_s14 = scalar_lea.vmem %s879_s0, %s666_s11  ;;  %v683_v44 = vld [vmem:[%s880_s1] ss:$0 sm:$0xff]  ;;  %s807_s13 = scalar_lea.vmem %s888_s9, %s667_s29  ;;  %vm523_vm10 = vsmask.f32 256  ;;  %vm556_vm13 = vcmask 257024  }
   0xe   : > { %v334_v0 = vld [vmem:[%s327_s14] sm:$0xff]  ;;  %v335_v2 = vld [vmem:[%s327_s14 + $0x8] sm:$0xff]  ;;  %vm816_vm11 = vmand %vm522_vm9, %vm523_vm10 }
   0xf   : > { %v339_v1 = vsel %vm338_vm0, %v334_v0, 0.0  ;;  %v342_v3 = vsel %vm338_vm0, %v335_v2, 0.0  ;;  %v684_v49 = vld [vmem:[%s881_s2] ss:$0 sm:$0xff] }
  0x10   : > { %340 = vadd.xlane.f32.xlu0 %v339_v1  ;;  %445 = vmatpush.bf16.msra.mxu0 %v670_v22  ;;  %v685_v55 = vld [vmem:[%s883_s4] ss:$0 sm:$0xff] }
  0x11   : > { %v519_v1 = vld [vmem:[%s887_s8] sm:$0x1] }
  0x12   : > { %v689_v5 = vpop.eup %688 }
  0x13   : > { %v346_v6 = vmul.f32 64.0, %v689_v5  ;;  %vm350_vm1 = vweird.f32 %v689_v5 }
  0x14   : > { %446 = vmatpush.bf16.msra.mxu0 %v669_v23 }
  0x15   : > { %v347_v7 = vsub.f32 1.0, %v346_v6 }
  0x17   : > { %v348_v8 = vmul.f32 %v689_v5, %v347_v7 }
  0x18   : > { %343 = vadd.xlane.f32.xlu0 %v342_v3  ;;  %447 = vmatpush.bf16.msra.mxu0 %v668_v25 }
  0x19   : > { %v349_v9 = vadd.f32 %v689_v5, %v348_v8 }
  0x1b   : > { %v351_v10 = vsel %vm350_vm1, %v689_v5, %v349_v9  ;;  %v525_v5 = vld [vmem:[%s807_s13] sm:$0x1] }
  0x83   : > { %v341_v11 = vpop.xlane.xlu0 %340 }
  0x84   : > { %v352_v12 = vmul.f32 %v351_v10, %v341_v11 }
  0x86   : > { %v354_v13 = vsub.f32 %v334_v0, %v352_v12  ;;  %v518_v0 = vld [vmem:[%s886_s7] sm:$0x1] }
  0x87   : > { %v520_v3 = vadd.f32 %v519_v1, %v518_v0 }
  0x88   : > { %v356_v14 = vmul.f32 %v354_v13, %v354_v13 }
  0x89   : > { %v521_v6 = vpack.c.bf16 %v520_v3, %v520_v3 }
  0x8a   : > { %v358_v15 = vsel %vm338_vm0, %v356_v14, 0.0 }
  0x8b   : > { %359 = vadd.xlane.f32.xlu1 %v358_v15  ;;  %v344_v16 = vpop.xlane.xlu0 %343  ;;  %v526_v8 = vsel %vm816_vm11, %v521_v6, %v525_v5 }
  0x8c   : > { %v353_v17 = vmul.f32 %v351_v10, %v344_v16  ;;  %527 = vst [vmem:[%s807_s13] sm:$0x1] %v526_v8 }
  0x8e   : > { %v355_v18 = vsub.f32 %v335_v2, %v353_v17 }
  0x90   : > { %v357_v19 = vmul.f32 %v355_v18, %v355_v18 }
  0x92   : > { %v361_v20 = vsel %vm338_vm0, %v357_v19, 0.0 }
  0x93   : > { %362 = vadd.xlane.f32.xlu1 %v361_v20  ;;  %v559_v1 = vld [vmem:[%s807_s13] sm:$0xf] }
  0xfe   : > { %v360_v24 = vpop.xlane.xlu1 %359 }
  0xff   : > { %v364_v26 = vmul.f32 %v360_v24, %v351_v10 }
 0x101   : > { %v366_v27 = vadd.f32 1e-05, %v364_v26 }
 0x103   : > { %690 = vrsqrt.f32 %v366_v27  ;;  %vm374_vm3 = vweird.f32 %v366_v27 }
 0x106   : > { %v363_v28 = vpop.xlane.xlu1 %362 }
 0x107   : > { %v365_v29 = vmul.f32 %v363_v28, %v351_v10 }
 0x109   : > { %v691_v30 = vpop.eup %690  ;;  %v367_v31 = vadd.f32 1e-05, %v365_v29 }
 0x10a   : > { %v369_v32 = vmul.f32 %v691_v30, %v366_v27  ;;  %vm375_vm2 = vweird.f32 %v691_v30 }
 0x10b   : > { %692 = vrsqrt.f32 %v367_v31  ;;  %vm376_vm4 = vmor %vm374_vm3, %vm375_vm2  ;;  %vm384_vm6 = vweird.f32 %v367_v31 }
 0x10c   : > { %v370_v33 = vmul.f32 %v691_v30, %v369_v32  ;;  %694 = vrcp.f32 %v709_v61 }
 0x10e   : > { %v371_v34 = vmul.f32 0.5, %v370_v33 }
 0x110   : > { %v372_v35 = vsub.f32 1.5, %v371_v34 }
 0x111   : > { %v693_v36 = vpop.eup %692 }
 0x112   : > { %v373_v37 = vmul.f32 %v691_v30, %v372_v35  ;;  %v379_v38 = vmul.f32 %v693_v36, %v367_v31  ;;  %vm385_vm5 = vweird.f32 %v693_v36  ;;  %v695_v62 = vpop.eup %694  ;;  %v710_v31 = vmov 0  }
 0x113   : > { %vm386_vm7 = vmor %vm384_vm6, %vm385_vm5  ;;  %v464_v63 = vmul.f32 32.0, %v695_v62  ;;  %vm468_vm12 = vweird.f32 %v695_v62  ;;  %570 = vst.msk [vmem:[%s807_s13 + $0xc] sm:$0xf] %vm556_vm13, %v710_v31  ;;  %vm557_vm5 = vsmask.f32 7938 }
 0x114   : > { %v380_v39 = vmul.f32 %v693_v36, %v379_v38  ;;  %v377_v40 = vsel %vm376_vm4, %v691_v30, %v373_v37  ;;  %571 = vst.msk [vmem:[%s807_s13 + $0x10] sm:$0xf] %vm556_vm13, %v710_v31  ;;  %vm534_vm4 = vsmask.f32 4368 }
 0x115   : > { %v388_v43 = vmul.f32 %v377_v40, %v354_v13  ;;  %v465_v2 = vsub.f32 1.0, %v464_v63  ;;  %572 = vst.msk [vmem:[%s807_s13 + $0x14] sm:$0xf] %vm556_vm13, %v710_v31  ;;  %vm535_vm6 = vmor %vm523_vm10, %vm534_vm4 }
 0x116   : > { %v381_v41 = vmul.f32 0.5, %v380_v39  ;;  %573 = vst.msk [vmem:[%s807_s13 + $0x18] sm:$0xf] %vm556_vm13, %v710_v31  ;;  %v687_v39 = vld [vmem:[%s885_s6] ss:$0 sm:$0xff] }
 0x117   : > { %v393_v48 = vmul.f32 %v683_v44, %v388_v43  ;;  %v466_v7 = vmul.f32 %v695_v62, %v465_v2  ;;  %574 = vst.msk [vmem:[%s807_s13 + $0x1c] sm:$0xf] %vm556_vm13, %v710_v31  ;;  %v529_v43 = vld [vmem:[%s887_s8 + $0x9] sm:$0xff] }
 0x118   : > { %v382_v42 = vsub.f32 1.5, %v381_v41  ;;  %575 = vst.msk [vmem:[%s807_s13 + $0x20] sm:$0xf] %vm556_vm13, %v710_v31 }
 0x119   : > { %v398_v51 = vadd.f32 %v684_v49, %v393_v48  ;;  %v467_v9 = vadd.f32 %v695_v62, %v466_v7  ;;  %576 = vst.msk [vmem:[%s807_s13 + $0x24] sm:$0xf] %vm556_vm13, %v710_v31 }
 0x11a   : > { %v383_v45 = vmul.f32 %v693_v36, %v382_v42  ;;  %577 = vst.msk [vmem:[%s807_s13 + $0x28] sm:$0xf] %vm556_vm13, %v710_v31 }
 0x11b   : > { %v469_v10 = vsel %vm468_vm12, %v695_v62, %v467_v9  ;;  %578 = vst.msk [vmem:[%s807_s13 + $0x2c] sm:$0xf] %vm556_vm13, %v710_v31 }
 0x11c   : > { %v387_v46 = vsel %vm386_vm7, %v693_v36, %v383_v45  ;;  %v686_v36 = vld [vmem:[%s884_s5] ss:$0 sm:$0xff]  ;;  %579 = vst.msk [vmem:[%s807_s13 + $0x30] sm:$0xf] %vm556_vm13, %v710_v31  ;;  %vm558_vm7 = vmand %vm556_vm13, %vm557_vm5 }
 0x11d   : > { %v389_v47 = vmul.f32 %v387_v46, %v355_v18  ;;  %580 = vst.msk [vmem:[%s807_s13 + $0x34] sm:$0xf] %vm556_vm13, %v710_v31 }
 0x11e   : > { %581 = vst.msk [vmem:[%s807_s13 + $0x38] sm:$0xf] %vm556_vm13, %v710_v31 }
 0x11f   : > { %v394_v50 = vmul.f32 %v683_v44, %v389_v47  ;;  %582 = vst.msk [vmem:[%s807_s13 + $0x3c] sm:$0xf] %vm556_vm13, %v710_v31 }
 0x121   : > { %v399_v52 = vadd.f32 %v684_v49, %v394_v50 }
 0x123   : > { %v400_v53 = vpack.c.bf16 %v399_v52, %v398_v51 }
 0x125   : > { %663 = vmatmul.msk.bf16.vlgmr.msra.gmra.mxu0 %vm338_vm0, %v400_v53  ;;  %v528_v53 = vld [vmem:[%s887_s8 + $0x1] sm:$0xff] }
 0x1a2   : > { %v449_v54 = vpop.f32.mrf.mxu0 }
 0x1a3   : > { %v450_v59 = vadd.f32 %v685_v55, %v449_v54 }
 0x1a5   : > { %v457_v60 = vsel %vm456_vm8, %v450_v59, 0.0 }
 0x1aa   : > { %v451_v56 = vpop.f32.mrf.mxu0 }
 0x1ab   : > { %v452_v57 = vadd.f32 %v685_v55, %v451_v56  ;;  %v564_v56 = vld [vmem:[%s807_s13 + $0x8] sm:$0x1] }
 0x1ad   : > { %v460_v58 = vsel %vm456_vm8, %v452_v57, 0.0 }
 0x1ae   : > { %461 = vadd.xlane.f32.xlu2 %v460_v58 }
 0x1b6   : > { %458 = vadd.xlane.f32.xlu2 %v457_v60 }
 0x221   : > { %v462_v11 = vpop.xlane.xlu2 %461 }
 0x222   : > { %v471_v12 = vmul.f32 %v469_v10, %v462_v11 }
 0x224   : > { %v473_v13 = vsub.f32 %v452_v57, %v471_v12 }
 0x226   : > { %v475_v14 = vmul.f32 %v473_v13, %v473_v13 }
 0x228   : > { %v479_v15 = vsel %vm456_vm8, %v475_v14, 0.0 }
 0x229   : > { %480 = vadd.xlane.f32.xlu0 %v479_v15  ;;  %v459_v16 = vpop.xlane.xlu2 %458 }
 0x22a   : > { %v470_v17 = vmul.f32 %v469_v10, %v459_v16 }
 0x22c   : > { %v472_v18 = vsub.f32 %v450_v59, %v470_v17 }
 0x22e   : > { %v474_v19 = vmul.f32 %v472_v18, %v472_v18 }
 0x230   : > { %v476_v20 = vsel %vm456_vm8, %v474_v19, 0.0 }
 0x231   : > { %477 = vadd.xlane.f32.xlu1 %v476_v20 }
 0x29c   : > { %v481_v21 = vpop.xlane.xlu0 %480 }
 0x29d   : > { %v483_v22 = vmul.f32 %v481_v21, %v469_v10 }
 0x29f   : > { %v485_v23 = vadd.f32 1e-05, %v483_v22 }
 0x2a1   : > { %696 = vrsqrt.f32 %v485_v23  ;;  %vm502_vm15 = vweird.f32 %v485_v23 }
 0x2a4   : > { %v478_v24 = vpop.xlane.xlu1 %477 }
 0x2a5   : > { %v482_v25 = vmul.f32 %v478_v24, %v469_v10 }
 0x2a7   : > { %v697_v26 = vpop.eup %696  ;;  %v484_v27 = vadd.f32 1e-05, %v482_v25 }
 0x2a8   : > { %v497_v28 = vmul.f32 %v697_v26, %v485_v23  ;;  %vm503_vm14 = vweird.f32 %v697_v26 }
 0x2a9   : > { %698 = vrsqrt.f32 %v484_v27  ;;  %vm504_vm0 = vmor %vm502_vm15, %vm503_vm14  ;;  %vm492_vm2 = vweird.f32 %v484_v27 }
 0x2aa   : > { %v498_v29 = vmul.f32 %v697_v26, %v497_v28 }
 0x2ac   : > { %v499_v30 = vmul.f32 0.5, %v498_v29 }
 0x2ae   : > { %v500_v32 = vsub.f32 1.5, %v499_v30 }
 0x2af   : > { %v699_v33 = vpop.eup %698 }
 0x2b0   : > { %v501_v34 = vmul.f32 %v697_v26, %v500_v32  ;;  %v487_v35 = vmul.f32 %v699_v33, %v484_v27  ;;  %vm493_vm1 = vweird.f32 %v699_v33 }
 0x2b1   : > { %vm494_vm3 = vmor %vm492_vm2, %vm493_vm1 }
 0x2b2   : > { %v505_v37 = vsel %vm504_vm0, %v697_v26, %v501_v34  ;;  %v488_v38 = vmul.f32 %v699_v33, %v487_v35 }
 0x2b3   : > { %v507_v40 = vmul.f32 %v505_v37, %v473_v13 }
 0x2b4   : > { %v489_v41 = vmul.f32 0.5, %v488_v38 }
 0x2b5   : > { %v512_v42 = vmul.f32 %v686_v36, %v507_v40 }
 0x2b6   : > { %v490_v44 = vsub.f32 1.5, %v489_v41 }
 0x2b7   : > { %v517_v45 = vadd.f32 %v687_v39, %v512_v42 }
 0x2b8   : > { %v491_v46 = vmul.f32 %v699_v33, %v490_v44 }
 0x2b9   : > { %v531_v47 = vadd.f32 %v529_v43, %v517_v45 }
 0x2ba   : > { %v495_v48 = vsel %vm494_vm3, %v699_v33, %v491_v46 }
 0x2bb   : > { %v533_v49 = vpack.c.bf16 %v531_v47, %v531_v47  ;;  %v506_v50 = vmul.f32 %v495_v48, %v472_v18 }
 0x2bd   : > { %v545_v51 = vshrl.u32 %v533_v49, 16  ;;  %v511_v52 = vmul.f32 %v686_v36, %v506_v50  ;;  %v548_v62 = vshll.u32 %v533_v49, 16 }
 0x2bf   : > { %v547_v54 = vrot.slane %v545_v51, 7  ;;  %v516_v55 = vadd.f32 %v687_v39, %v511_v52 }
 0x2c1   : > { %v552_v57 = vrot.slane %v547_v54, 4  ;;  %v530_v58 = vadd.f32 %v528_v53, %v516_v55  ;;  %v550_v2 = vor.u32 %v548_v62, %v547_v54 }
 0x2c3   : > { %v565_v59 = vsel %vm816_vm11, %v552_v57, %v564_v56  ;;  %v532_v60 = vpack.c.bf16 %v530_v58, %v530_v58 }
 0x2c4   : > { %566 = vst [vmem:[%s807_s13 + $0x8] sm:$0x1] %v565_v59 }
 0x2c5   : > { %v537_v61 = vshrl.u32 %v532_v60, 16  ;;  %v540_v0 = vshll.u32 %v532_v60, 16 }
 0x2c7   : > { %v539_v63 = vrot.slane %v537_v61, 7 }
 0x2c9   : > { %v542_v3 = vor.u32 %v540_v0, %v539_v63  ;;  %v543_v4 = vrot.slane %v539_v63, 4 }
 0x2cb   : > { %v567_v5 = vld [vmem:[%s807_s13 + $0x8] sm:$0xf]  ;;  %v551_v6 = vsel %vm535_vm6, %v543_v4, %v550_v2  ;;  %v560_v7 = vsel %vm558_vm7, %v542_v3, %v559_v1 }
 0x2cc   : > { %v568_v8 = vsel %vm558_vm7, 0, %v567_v5  ;;  %561 = vst [vmem:[%s807_s13] sm:$0xf] %v560_v7 }
 0x2cd   : > { %569 = vst [vmem:[%s807_s13 + $0x8] sm:$0xf] %v568_v8 }
 0x2ce   : > { %563 = vst.msk [vmem:[%s807_s13 + $0x4] sm:$0xf] %vm556_vm13, %v551_v6 }
 0x2cf PF: > { %s19_s30 = sadd.s32 1, %s706_s30  }
 0x2d0   : > { %p16_p4 = scmp.ge.s32.totalorder %s19_s30, 4  }
 0x2d2   :  { %18 = sbr.rel (!%p16_p4) target bundleno = 1 (0x1), region = 86 }

</bundles_post_ra>
